<compile_context>
chip_gen: v7x
topology: tpu7x:2x2x1
jax: 0.10.0
libtpu: 0.0.40
codegen_flags: <defaults>
</compile_context>

<pallas_src>
import functools

import jax
import jax.numpy as jnp
from jax.experimental import pallas as pl
from jax.experimental.pallas import tpu as pltpu

_LANE = 128
# Per-grid-step byte budget for the x tile (Cin * R * 128 * itemsize).
_X_TILE_BYTES = 4 * 1024 * 1024


def _convt1x1_clamp_kernel(w_ref, b_ref, x_ref, o_ref, *, cin, cout,
                           min_value, max_value):
    # w_ref: (cin*cout,) f32 in SMEM   (W[c, o] stored at index c*cout + o)
    # b_ref: (cout,)     f32 in SMEM
    # x_ref: (1, cin,  R, 128) VMEM tile (sublane/lane dense per channel)
    # o_ref: (1, cout, R, 128) VMEM tile
    for o in range(cout):                                   # Cout=2: unrolled
        acc = x_ref[0, 0].astype(jnp.float32) * w_ref[o]    # (R,128) VPU bcast mul
        for c in range(1, cin):                              # Cin=4: unrolled FMAs
            acc = acc + x_ref[0, c].astype(jnp.float32) * w_ref[c * cout + o]
        acc = acc + b_ref[o]
        acc = jnp.maximum(acc, jnp.float32(min_value))       # clamp_min
        acc = jnp.minimum(acc, jnp.float32(max_value))       # clamp_max
        o_ref[0, o] = acc.astype(o_ref.dtype)                # dense full-width store


def _pick_row_tile(r_total, cin, itemsize):
    """Rows (of 128 lanes) per grid step, derived from a per-step byte budget."""
    rows_budget = max(8, _X_TILE_BYTES // (cin * _LANE * itemsize))
    rows_budget -= rows_budget % 8          # keep (8,128) alignment when tiled
    if r_total <= rows_budget:
        return r_total                      # full extent: always legal
    return rows_budget                      # multiple of 8: legal tiled block


def conv_transpose_1x1_clamp(x_nchw, weight, bias, min_value=-4, max_value=5):
    """x_nchw: (N, Cin, H, W); weight: (Cin, Cout) [ConvTranspose2d weight with
    kH=kW=1 squeezed]; bias: (Cout,). Returns (N, Cout, H, W)."""
    N, Cin, H, W = x_nchw.shape
    Cout = weight.shape[1]
    HW = H * W
    itemsize = jnp.dtype(x_nchw.dtype).itemsize

    # Pixels -> (rows, 128) dense layout.  Pad the pixel axis up to a multiple
    # of 128 (and of the row tile) so every block is lane/sublane dense; the
    # padded tail is sliced off after the kernel.
    r_total = pl.cdiv(HW, _LANE)
    R = _pick_row_tile(r_total, Cin, itemsize)
    n_tiles = pl.cdiv(r_total, R)
    r_padded = n_tiles * R
    hw_padded = r_padded * _LANE

    x3 = x_nchw.reshape(N, Cin, HW)                       # free (contiguous) reshape
    if hw_padded != HW:
        x3 = jnp.pad(x3, ((0, 0), (0, 0), (0, hw_padded - HW)))
    x4 = x3.reshape(N, Cin, r_padded, _LANE)

    w_flat = weight.reshape(Cin * Cout).astype(jnp.float32)
    b_flat = bias.reshape(Cout).astype(jnp.float32)

    kernel = functools.partial(
        _convt1x1_clamp_kernel,
        cin=Cin, cout=Cout,
        min_value=float(min_value), max_value=float(max_value),
    )

    out4 = pl.pallas_call(
        kernel,
        out_shape=jax.ShapeDtypeStruct((N, Cout, r_padded, _LANE), x_nchw.dtype),
        grid_spec=pl.GridSpec(
            grid=(N, n_tiles),
            in_specs=[
                pl.BlockSpec(memory_space=pltpu.MemorySpace.SMEM),       # weights
                pl.BlockSpec(memory_space=pltpu.MemorySpace.SMEM),       # bias
                pl.BlockSpec((1, Cin, R, _LANE), lambda n, t: (n, 0, t, 0)),
            ],
            out_specs=pl.BlockSpec((1, Cout, R, _LANE), lambda n, t: (n, 0, t, 0)),
        ),
        compiler_params=pltpu.CompilerParams(
            dimension_semantics=("parallel", "parallel"),
            vmem_limit_bytes=28 * 1024 * 1024,
        ),
        cost_estimate=pl.CostEstimate(
            flops=2 * N * HW * Cin * Cout,
            transcendentals=0,
            bytes_accessed=itemsize * N * HW * (Cin + Cout),
        ),
    )(w_flat, b_flat, x4)

    out3 = out4.reshape(N, Cout, hw_padded)
    if hw_padded != HW:
        out3 = out3[:, :, :HW]
    return out3.reshape(N, Cout, H, W)


if __name__ == "__main__":
    # Small shapes consistent with the module: channels=4 -> out channels=2.
    N, C, Hs, Ws = 2, 4, 16, 16
    Cout = C // 2
    min_value, max_value = -4, 5

    key = jax.random.PRNGKey(0)
    kx, kw, kb = jax.random.split(key, 3)

    x = jax.random.normal(kx, (N, C, Hs, Ws), dtype=jnp.float32)
    # ConvTranspose2d weight shape is (in_channels, out_channels, 1, 1); squeeze kH,kW.
    bound = 1.0 / (C ** 0.5)
    weight = jax.random.uniform(kw, (C, Cout), jnp.float32, -bound, bound)
    bias = jax.random.uniform(kb, (Cout,), jnp.float32, -bound, bound)

    out = conv_transpose_1x1_clamp(x, weight, bias, min_value, max_value)
    out = jax.block_until_ready(out)

    # Pure-JAX reference (same math, no Pallas).
    ref = jnp.einsum("nchw,co->nohw", x, weight) + bias[None, :, None, None]
    ref = jnp.clip(ref, min_value, max_value)
    assert out.shape == (N, Cout, Hs, Ws)
    assert jnp.allclose(out, ref, atol=1e-5, rtol=1e-5)

    print("KERNEL_OK")
</pallas_src>

<mosaic_0001>
module attributes {stable_mosaic.version = 11 : i64} {
  func.func @_convt1x1_clamp_kernel(%arg0: i32, %arg1: i32, %arg2: memref<8xf32, #tpu.memory_space<smem>>, %arg3: memref<2xf32, #tpu.memory_space<smem>>, %arg4: memref<1x4x2x128xf32, #tpu.memory_space<vmem>>, %arg5: memref<1x2x2x128xf32, #tpu.memory_space<vmem>>) attributes {dimension_semantics = [#tpu.dimension_semantics<parallel>, #tpu.dimension_semantics<parallel>], iteration_bounds = array<i64: 2, 1>, scalar_prefetch = 0 : i64, scratch_operands = 0 : i64, tpu.core_type = #tpu.core_type<tc>, window_params = [{transform_indices = @transform_0, window_bounds = array<i64: 8>}, {transform_indices = @transform_1, window_bounds = array<i64: 2>}, {transform_indices = @transform_2, window_bounds = array<i64: 1, 4, 2, 128>}, {transform_indices = @transform_3, window_bounds = array<i64: 1, 2, 2, 128>}]} {
    %c0 = arith.constant 0 : index
    %c0_0 = arith.constant 0 : index
    %c0_1 = arith.constant 0 : index
    %c0_2 = arith.constant 0 : index
    %0 = vector.load %arg4[%c0, %c0_0, %c0_1, %c0_2] : memref<1x4x2x128xf32, #tpu.memory_space<vmem>>, vector<1x1x2x128xf32>
    %1 = vector.shape_cast %0 : vector<1x1x2x128xf32> to vector<2x128xf32>
    %c0_3 = arith.constant 0 : index
    %2 = memref.load %arg2[%c0_3] : memref<8xf32, #tpu.memory_space<smem>>
    %3 = vector.broadcast %2 : f32 to vector<2x128xf32>
    %4 = arith.mulf %1, %3 : vector<2x128xf32>
    %c0_4 = arith.constant 0 : index
    %c1 = arith.constant 1 : index
    %c0_5 = arith.constant 0 : index
    %c0_6 = arith.constant 0 : index
    %5 = vector.load %arg4[%c0_4, %c1, %c0_5, %c0_6] : memref<1x4x2x128xf32, #tpu.memory_space<vmem>>, vector<1x1x2x128xf32>
    %6 = vector.shape_cast %5 : vector<1x1x2x128xf32> to vector<2x128xf32>
    %c2 = arith.constant 2 : index
    %7 = memref.load %arg2[%c2] : memref<8xf32, #tpu.memory_space<smem>>
    %8 = vector.broadcast %7 : f32 to vector<2x128xf32>
    %9 = arith.mulf %6, %8 : vector<2x128xf32>
    %10 = arith.addf %4, %9 : vector<2x128xf32>
    %c0_7 = arith.constant 0 : index
    %c2_8 = arith.constant 2 : index
    %c0_9 = arith.constant 0 : index
    %c0_10 = arith.constant 0 : index
    %11 = vector.load %arg4[%c0_7, %c2_8, %c0_9, %c0_10] : memref<1x4x2x128xf32, #tpu.memory_space<vmem>>, vector<1x1x2x128xf32>
    %12 = vector.shape_cast %11 : vector<1x1x2x128xf32> to vector<2x128xf32>
    %c4 = arith.constant 4 : index
    %13 = memref.load %arg2[%c4] : memref<8xf32, #tpu.memory_space<smem>>
    %14 = vector.broadcast %13 : f32 to vector<2x128xf32>
    %15 = arith.mulf %12, %14 : vector<2x128xf32>
    %16 = arith.addf %10, %15 : vector<2x128xf32>
    %c0_11 = arith.constant 0 : index
    %c3 = arith.constant 3 : index
    %c0_12 = arith.constant 0 : index
    %c0_13 = arith.constant 0 : index
    %17 = vector.load %arg4[%c0_11, %c3, %c0_12, %c0_13] : memref<1x4x2x128xf32, #tpu.memory_space<vmem>>, vector<1x1x2x128xf32>
    %18 = vector.shape_cast %17 : vector<1x1x2x128xf32> to vector<2x128xf32>
    %c6 = arith.constant 6 : index
    %19 = memref.load %arg2[%c6] : memref<8xf32, #tpu.memory_space<smem>>
    %20 = vector.broadcast %19 : f32 to vector<2x128xf32>
    %21 = arith.mulf %18, %20 : vector<2x128xf32>
    %22 = arith.addf %16, %21 : vector<2x128xf32>
    %c0_14 = arith.constant 0 : index
    %23 = memref.load %arg3[%c0_14] : memref<2xf32, #tpu.memory_space<smem>>
    %24 = vector.broadcast %23 : f32 to vector<2x128xf32>
    %25 = arith.addf %22, %24 : vector<2x128xf32>
    %cst = arith.constant -4.000000e+00 : f32
    %26 = vector.broadcast %cst : f32 to vector<2x128xf32>
    %27 = arith.maximumf %25, %26 : vector<2x128xf32>
    %cst_15 = arith.constant 5.000000e+00 : f32
    %28 = vector.broadcast %cst_15 : f32 to vector<2x128xf32>
    %29 = arith.minimumf %27, %28 : vector<2x128xf32>
    %c0_16 = arith.constant 0 : index
    %c0_17 = arith.constant 0 : index
    %c0_18 = arith.constant 0 : index
    %c0_19 = arith.constant 0 : index
    %30 = vector.load %arg5[%c0_16, %c0_17, %c0_18, %c0_19] : memref<1x2x2x128xf32, #tpu.memory_space<vmem>>, vector<1x1x2x128xf32>
    %31 = vector.shape_cast %30 : vector<1x1x2x128xf32> to vector<2x128xf32>
    %32 = vector.shape_cast %29 : vector<2x128xf32> to vector<1x1x2x128xf32>
    tpu.vector_store %arg5[%c0_16, %c0_17, %c0_18, %c0_19], %32 {strides = array<i32>} : memref<1x2x2x128xf32, #tpu.memory_space<vmem>>, vector<1x1x2x128xf32>,
    %c0_20 = arith.constant 0 : index
    %c0_21 = arith.constant 0 : index
    %c0_22 = arith.constant 0 : index
    %c0_23 = arith.constant 0 : index
    %33 = vector.load %arg4[%c0_20, %c0_21, %c0_22, %c0_23] : memref<1x4x2x128xf32, #tpu.memory_space<vmem>>, vector<1x1x2x128xf32>
    %34 = vector.shape_cast %33 : vector<1x1x2x128xf32> to vector<2x128xf32>
    %c1_24 = arith.constant 1 : index
    %35 = memref.load %arg2[%c1_24] : memref<8xf32, #tpu.memory_space<smem>>
    %36 = vector.broadcast %35 : f32 to vector<2x128xf32>
    %37 = arith.mulf %34, %36 : vector<2x128xf32>
    %c0_25 = arith.constant 0 : index
    %c1_26 = arith.constant 1 : index
    %c0_27 = arith.constant 0 : index
    %c0_28 = arith.constant 0 : index
    %38 = vector.load %arg4[%c0_25, %c1_26, %c0_27, %c0_28] : memref<1x4x2x128xf32, #tpu.memory_space<vmem>>, vector<1x1x2x128xf32>
    %39 = vector.shape_cast %38 : vector<1x1x2x128xf32> to vector<2x128xf32>
    %c3_29 = arith.constant 3 : index
    %40 = memref.load %arg2[%c3_29] : memref<8xf32, #tpu.memory_space<smem>>
    %41 = vector.broadcast %40 : f32 to vector<2x128xf32>
    %42 = arith.mulf %39, %41 : vector<2x128xf32>
    %43 = arith.addf %37, %42 : vector<2x128xf32>
    %c0_30 = arith.constant 0 : index
    %c2_31 = arith.constant 2 : index
    %c0_32 = arith.constant 0 : index
    %c0_33 = arith.constant 0 : index
    %44 = vector.load %arg4[%c0_30, %c2_31, %c0_32, %c0_33] : memref<1x4x2x128xf32, #tpu.memory_space<vmem>>, vector<1x1x2x128xf32>
    %45 = vector.shape_cast %44 : vector<1x1x2x128xf32> to vector<2x128xf32>
    %c5 = arith.constant 5 : index
    %46 = memref.load %arg2[%c5] : memref<8xf32, #tpu.memory_space<smem>>
    %47 = vector.broadcast %46 : f32 to vector<2x128xf32>
    %48 = arith.mulf %45, %47 : vector<2x128xf32>
    %49 = arith.addf %43, %48 : vector<2x128xf32>
    %c0_34 = arith.constant 0 : index
    %c3_35 = arith.constant 3 : index
    %c0_36 = arith.constant 0 : index
    %c0_37 = arith.constant 0 : index
    %50 = vector.load %arg4[%c0_34, %c3_35, %c0_36, %c0_37] : memref<1x4x2x128xf32, #tpu.memory_space<vmem>>, vector<1x1x2x128xf32>
    %51 = vector.shape_cast %50 : vector<1x1x2x128xf32> to vector<2x128xf32>
    %c7 = arith.constant 7 : index
    %52 = memref.load %arg2[%c7] : memref<8xf32, #tpu.memory_space<smem>>
    %53 = vector.broadcast %52 : f32 to vector<2x128xf32>
    %54 = arith.mulf %51, %53 : vector<2x128xf32>
    %55 = arith.addf %49, %54 : vector<2x128xf32>
    %c1_38 = arith.constant 1 : index
    %56 = memref.load %arg3[%c1_38] : memref<2xf32, #tpu.memory_space<smem>>
    %57 = vector.broadcast %56 : f32 to vector<2x128xf32>
    %58 = arith.addf %55, %57 : vector<2x128xf32>
    %cst_39 = arith.constant -4.000000e+00 : f32
    %59 = vector.broadcast %cst_39 : f32 to vector<2x128xf32>
    %60 = arith.maximumf %58, %59 : vector<2x128xf32>
    %cst_40 = arith.constant 5.000000e+00 : f32
    %61 = vector.broadcast %cst_40 : f32 to vector<2x128xf32>
    %62 = arith.minimumf %60, %61 : vector<2x128xf32>
    %c0_41 = arith.constant 0 : index
    %c1_42 = arith.constant 1 : index
    %c0_43 = arith.constant 0 : index
    %c0_44 = arith.constant 0 : index
    %63 = vector.load %arg5[%c0_41, %c1_42, %c0_43, %c0_44] : memref<1x2x2x128xf32, #tpu.memory_space<vmem>>, vector<1x1x2x128xf32>
    %64 = vector.shape_cast %63 : vector<1x1x2x128xf32> to vector<2x128xf32>
    %65 = vector.shape_cast %62 : vector<2x128xf32> to vector<1x1x2x128xf32>
    tpu.vector_store %arg5[%c0_41, %c1_42, %c0_43, %c0_44], %65 {strides = array<i32>} : memref<1x2x2x128xf32, #tpu.memory_space<vmem>>, vector<1x1x2x128xf32>,
    return
  }
  func.func @transform_0(%arg0: i32, %arg1: i32) -> i32 {
    %c0_i32 = arith.constant 0 : i32
    %c0_i32_0 = arith.constant 0 : i32
    return %c0_i32 : i32
  }
  func.func @transform_1(%arg0: i32, %arg1: i32) -> i32 {
    %c0_i32 = arith.constant 0 : i32
    %c0_i32_0 = arith.constant 0 : i32
    return %c0_i32 : i32
  }
  func.func @transform_2(%arg0: i32, %arg1: i32) -> (i32, i32, i32, i32) {
    %c0_i32 = arith.constant 0 : i32
    %c0_i32_0 = arith.constant 0 : i32
    %c0_i32_1 = arith.constant 0 : i32
    return %arg0, %c0_i32, %arg1, %c0_i32_0 : i32, i32, i32, i32
  }
  func.func @transform_3(%arg0: i32, %arg1: i32) -> (i32, i32, i32, i32) {
    %c0_i32 = arith.constant 0 : i32
    %c0_i32_0 = arith.constant 0 : i32
    %c0_i32_1 = arith.constant 0 : i32
    return %arg0, %c0_i32, %arg1, %c0_i32_0 : i32, i32, i32, i32
  }
}

</mosaic_0001>

<bundles_post_ra>
// kernel: tpu_custom_call.1
= control target key start
LH: loop header
LB: loop body
LE: loop exit
PB: predicated region body
PF: predicated region fallthrough
CT: control target
= control target key end

     0   :  { %8 = vsyncpa [#allocation5], 0  ;;  %s946_s0 = inlined_call_operand.hbm [shape: f32[8], index: 0, kind: input, shape index: {}]   ;;  %s947_s1 = inlined_call_operand.vmem [shape: f32[2], index: 1, kind: input, shape index: {}]   ;;  %s948_s2 = inlined_call_operand.hbm [shape: f32[2,4,2,128], index: 2, kind: input, shape index: {}]   ;;  %s949_s3 = inlined_call_operand.hbm [shape: f32[2,2,2,128], index: 3, kind: output, shape index: {}]  }
   0x1   :  { %9 = vsyncpa [#allocation6], 0 }
   0x2   :  { %10 = vsyncpa [#allocation3], 0 }
   0x3   :  { %12 = vsyncpa [#allocation3 + $0x1], 0 }
   0x4   :  { %13 = vsyncpa [#allocation4], 0 }
   0x5   :  { %15 = vsyncpa [#allocation4 + $0x1], 0  ;;  %s710_s12 = smov 0   ;;  %s712_s13 = smov 0  }
   0x6   :  { %s714_s14 = smov 0   ;;  %s716_s15 = smov 0  }
   0x7   :  { %s718_s16 = smov 0   ;;  %s720_s17 = smov 0  }
   0x8 LB: > { %s409_s18 = sadd.s32 4294967295, %s680_s17   ;;  %s410_s19 = sadd.s32 4294967294, %s680_s17   ;;  %s680_s17 = sphi %s720_s17, %s21_s17   ;;  %s676_s16 = sphi %s718_s16, %s970_s16   ;;  %s672_s15 = sphi %s716_s15, %s969_s15   ;;  %s668_s14 = sphi %s714_s14, %s968_s14   ;;  %s664_s13 = sphi %s712_s13, %s967_s13   ;;  %s660_s12 = sphi %s710_s12, %s966_s12  }
   0x9   : > { %s84_s20 = sadd.s32 1, %s668_s14  ;;  %p91_p0 = scmp.ne.s32.totalorder %s668_s14, %s664_s13 }
   0xa   : > { %p92_p1 = scmp.eq.s32.totalorder %s680_s17, 0  ;;  %p97_p2 = scmp.ne.s32.totalorder %s664_s13, %s660_s12 }
   0xb   : > { %p748_p3 = scmp.eq.s32.totalorder %s409_s18, 0  ;;  %p123_p4 = scmp.eq.s32.totalorder %s409_s18, 1 }
   0xc   : > { %p93_p5 = por %p92_p1, %p91_p0  ;;  %p129_p6 = scmp.eq.s32.totalorder %s410_s19, 1 }
   0xd   : > { %s954_s21 = scalar_select %p748_p3, 1, 0 }
   0xe   : > { %p754_p7 = por %p748_p3, %p97_p2  ;;  %p758_p8 = por %p123_p4, %p91_p0 }
   0xf   : > { %p762_p9 = por %p129_p6, %p97_p2  ;;  %p411_p10 = scmp.ge.s32.totalorder %s680_s17, 1 }
  0x10   : > { %s955_s22 = scalar_select %p754_p7, 1, 0 }
  0x11   : > { %s956_s23 = scalar_select %p758_p8, 1, 0 }
  0x12   : > { %s957_s24 = scalar_select %p762_p9, 1, 0 }
  0x13   : > { %p136_p11 = scmp.lt.s32.totalorder %s680_s17, 3  ;;  %p474_p1 = scmp.lt.s32.totalorder %s680_s17, 2 }
  0x14   : > { %s158_s28 = sshll.u32 %s947_s1, 4  ;;  %s169_s4 = sand.u32 1, %s668_s14   ;;  %s159_s28 = int_to_ptr.vmem [resolvable:$true] %s158_s28 }
  0x15   : > { %p769_p13 = pnand %p411_p10, %p136_p11  ;;  %p779_p4 = pnand %p474_p1, %p93_p5 }
  0x16   : > { %s33_s5 = sadd.s32 1, %s676_s16  ;;  %s532_s8 = scalar_lea.hbm %s946_s0, 16 }
  0x17   : > { %p457_p0 = pneg %p769_p13  ;;  %p533_p5 = scmp.ne.s32.totalorder %s946_s0, %s532_s8 }
  0x18   : > { %p539_p1 = scmp.lt.u32.totalorder %s532_s8, %s946_s0 }
  0x19   : > { %p785_p2 = pnand %p457_p0, %p748_p3 }
  0x1b   : > { %p534_p6 = pneg %p785_p2 }
  0x1d   : > { %p535_p10 = pnand %p534_p6, %p533_p5 }
  0x1f   : > { %p536_p11 = pneg %p535_p10 }
  0x21   : > { %p541_p0 = pnand %p539_p1, %p536_p11 }
  0x23   : > { %544 = shalt.err (!%p541_p0)
}
  0x24   : > { %s682_s19 = smov [#allocation2]   ;;  %s545_s6 = scalar_lea.vmem %s159_s28, 16 }
  0x25   : > { %460 = dma.hbm_to_smem (!%p785_p2), %s946_s0, 16, %s682_s19, [#allocation5]  }
  0x26   : > { %p546_p12 = scmp.ne.s32.totalorder %s159_s28, %s545_s6  ;;  %p553_p7 = scmp.lt.s32.totalorder %s159_s28, %s159_s28 }
  0x27   : > { %p554_p5 = scmp.lt.s32.totalorder %s545_s6, %s545_s6 }
  0x28   : > { %p548_p9 = pnand %p546_p12, %p534_p6 }
  0x29   : > { %p555_p10 = por %p554_p5, %p553_p7 }
  0x2a   : > { %p549_p8 = pneg %p548_p9 }
  0x2c   : > { %p556_p3 = pnand %p555_p10, %p549_p8 }
  0x2e   : > { %559 = shalt.err (!%p556_p3)
}
  0x2f   : > { %s683_s7 = smov [#allocation7]   ;;  %p35_p11 = scmp.ge.s32.totalorder %s33_s5, 2 }
  0x30   : > { %463 = dma.vmem_to_smem (!%p785_p2), %s159_s28, 16, %s683_s7, [#allocation6]  }
  0x31   : > { %s415_s8 = sshll.u32 %s169_s4, 3  ;;  %s443_s9 = sshll.u32 %s676_s16, 7 }
  0x32   : > { %s972_s5 = smov (%p35_p11, %s33_s5), 0  ;;  %s817_s30 = scalar_lea.hbm %s948_s2, %s443_s9 }
  0x33   : > { %s79_s18 = ssub.s32 %s676_s16, %s972_s5  ;;  %s173_s19 = scalar_lea.vmem [#allocation8], %s415_s8 }
  0x34   : > { %s181_s28 = sshll.u32 %s173_s19, 4  ;;  %p82_p3 = scmp.eq.s32.totalorder %s79_s18, 0  ;;  %s821_s28 = int_to_ptr.vmem [resolvable:$true] %s181_s28 }
  0x35   : > { %s830_s27 = scalar_lea.sflag [#allocation3], %s169_s4  ;;  %s560_s6 = scalar_lea.hbm %s817_s30, 128 }
  0x36   : > { %s826_s26 = scalar_select %p82_p3, %s668_s14, %s84_s20  }
  0x37   : > { %p561_p7 = scmp.ne.s32.totalorder %s817_s30, %s560_s6  ;;  %p562_p8 = pneg %p779_p4 }
  0x38   : > { %s565_s9 = scalar_lea.hbm %s948_s2, 256  ;;  %p566_p2 = scmp.lt.u32.totalorder %s817_s30, %s948_s2 }
  0x39   : > { %p563_p9 = pnand %p562_p8, %p561_p7  ;;  %p567_p6 = scmp.lt.u32.totalorder %s565_s9, %s560_s6 }
  0x3a   : > { %p569_p0 = scmp.lt.u32.totalorder %s560_s6, %s817_s30 }
  0x3b   : > { %p564_p12 = pneg %p563_p9  ;;  %p568_p1 = por %p567_p6, %p566_p2 }
  0x3d   : > { %p570_p5 = por %p569_p0, %p568_p1 }
  0x3f   : > { %p571_p10 = pnand %p570_p5, %p564_p12 }
  0x41   : > { %574 = shalt.err (!%p571_p10)
}
  0x42   : > { %s575_s20 = scalar_lea.vmem %s821_s28, 128  ;;  %s684_s4 = smov [#allocation8]  }
  0x43   : > { %p576_p11 = scmp.ne.s32.totalorder %s821_s28, %s575_s20  ;;  %s580_s18 = sshll.u32 %s684_s4, 4  ;;  %s581_s18 = int_to_ptr.vmem [resolvable:$false] %s580_s18 }
  0x44   : > { %s582_s19 = scalar_lea.vmem %s581_s18, 256  ;;  %p583_p9 = scmp.lt.s32.totalorder %s821_s28, %s581_s18 }
  0x45   : > { %p578_p3 = pnand %p576_p11, %p562_p8  ;;  %p584_p2 = scmp.lt.s32.totalorder %s582_s19, %s575_s20 }
  0x47   : > { %p579_p7 = pneg %p578_p3  ;;  %p585_p6 = por %p584_p2, %p583_p9 }
  0x49   : > { %p586_p1 = pnand %p585_p6, %p579_p7 }
  0x4b   : > { %589 = shalt.err (!%p586_p1)
}
  0x4c   : > { %s685_s6 = smov 32   ;;  %s686_s7 = smov 2  }
  0x4d   : > { %467 = dma.hbm_to_vmem [thread:$0]  (!%p779_p4), %s817_s30, 128, %s821_s28, %s830_s27, %s685_s6, %s685_s6, %s686_s7  }
  0x4e   : > { %193 = sbr.rel (%p769_p13) target bundleno = 133 (0x85), region = 32  ;;  %p961_p8 = scmp.ne.s32.totalorder (!%p769_p13), %s954_s21, 0 }
  0x55   : > { %643 = dma.done.wait (%p961_p8), [#allocation5], 16  }
  0x56   : > { %645 = vsyncadd (%p961_p8), [#allocation5], 4294967280 }
  0x57   : > { %647 = dma.done.wait (%p961_p8), [#allocation6], 16  }
  0x58   : > { %649 = vsyncadd (%p961_p8), [#allocation6], 4294967280  ;;  %s869_s8 = sand.u32 1, %s664_s13   ;;  %p962_p13 = scmp.ne.s32.totalorder %s955_s22, 0 }
  0x59   : > { %s421_s25 = sshll.u32 %s869_s8, 3  ;;  %s204_s29 = scalar_lea.sflag [#allocation3], %s869_s8 }
  0x5a   : > { %s873_s30 = scalar_lea.vmem [#allocation8], %s421_s25 }
  0x5b   : > { %651 = dma.done.wait (%p962_p13), %s204_s29, 128  }
  0x5c   : > { %653 = vsyncadd (%p962_p13), %s204_s29, 4294967168 }
  0x5d   : > { %212 = sfence }
  0x5e   : > { %s232_s28 = sld [smem:[#allocation2]]  ;;  %s424_s21 = sld [smem:[#allocation2 + $0x2]]  ;;  %v231_v0 = vld [vmem:[%s873_s30] sm:$0x3]  ;;  %v423_v1 = vld [vmem:[%s873_s30 + $0x2] sm:$0x3] }
  0x5f   : > { %s426_s27 = sld [smem:[#allocation2 + $0x4]]  ;;  %s428_s9 = sld [smem:[#allocation2 + $0x6]]  ;;  %v425_v3 = vld [vmem:[%s873_s30 + $0x4] sm:$0x3]  ;;  %v427_v6 = vld [vmem:[%s873_s30 + $0x6] sm:$0x3] }
  0x60   : > { %s429_s10 = sld [smem:[#allocation2 + $0x1]]  ;;  %s881_s11 = sld [smem:[#allocation7]]  ;;  %v259_v9 = vld [vmem:[%s873_s30] sm:$0x3]  ;;  %v430_v12 = vld [vmem:[%s873_s30 + $0x2] sm:$0x3] }
  0x61   : > { %s431_s20 = sld [smem:[#allocation2 + $0x3]]  ;;  %s433_s22 = sld [smem:[#allocation2 + $0x5]]  ;;  %v432_v16 = vld [vmem:[%s873_s30 + $0x4] sm:$0x3]  ;;  %v434_v19 = vld [vmem:[%s873_s30 + $0x6] sm:$0x3] }
  0x62   : > { %s435_s4 = sld [smem:[#allocation2 + $0x7]]  ;;  %s436_s18 = sld [smem:[#allocation7 + $0x1]] }
  0x63   : > { %s422_s19 = sshll.u32 %s869_s8, 2  ;;  %s444_s25 = sshll.u32 %s672_s15, 6 }
  0x64   : > { %v233_v2 = vstv %s232_s28  ;;  %v238_v5 = vstv %s424_s21  ;;  %s230_s6 = scalar_lea.vmem [#allocation9], %s422_s19  ;;  %s897_s28 = scalar_lea.hbm %s949_s3, %s444_s25 }
  0x65   : > { %v234_v4 = vmul.f32 %v233_v2, %v231_v0  ;;  %v239_v7 = vmul.f32 %v423_v1, %v238_v5  ;;  %v244_v8 = vstv %s426_s27  ;;  %v250_v11 = vstv %s428_s9  ;;  %s300_s7 = sshll.u32 %s230_s6, 4  ;;  %s286_s21 = scalar_lea.sflag [#allocation4], %s869_s8  ;;  %s892_s7 = int_to_ptr.vmem [resolvable:$true] %s300_s7 }
  0x66   : > { %v245_v10 = vmul.f32 %v425_v3, %v244_v8  ;;  %v251_v14 = vmul.f32 %v427_v6, %v250_v11  ;;  %v261_v15 = vstv %s429_s10  ;;  %v254_v24 = vstv %s881_s11  ;;  %s590_s27 = scalar_lea.vmem %s892_s7, 64  ;;  %p963_p12 = scmp.ne.s32.totalorder %s956_s23, 0 }
  0x67   : > { %v240_v13 = vadd.f32 %v239_v7, %v234_v4  ;;  %v262_v17 = vmul.f32 %v261_v15, %v259_v9  ;;  %v265_v18 = vstv %s431_s20  ;;  %v270_v22 = vstv %s433_s22  ;;  %p591_p4 = scmp.ne.s32.totalorder %s892_s7, %s590_s27  ;;  %s687_s15 = smov [#allocation9]  }
  0x68   : > { %v266_v21 = vmul.f32 %v430_v12, %v265_v18  ;;  %v275_v23 = vstv %s435_s4  ;;  %v271_v25 = vmul.f32 %v432_v16, %v270_v22  ;;  %v279_v31 = vstv %s436_s18  ;;  %s594_s9 = sshll.u32 %s687_s15, 4  ;;  %s595_s9 = int_to_ptr.vmem [resolvable:$false] %s594_s9 }
  0x69   : > { %v246_v20 = vadd.f32 %v245_v10, %v240_v13  ;;  %v276_v28 = vmul.f32 %v434_v19, %v275_v23  ;;  %p592_p0 = pnand %p591_p4, %p963_p12  ;;  %s596_s10 = scalar_lea.vmem %s595_s9, 128 }
  0x6a   : > { %v267_v27 = vadd.f32 %v266_v21, %v262_v17  ;;  %p597_p10 = scmp.lt.s32.totalorder %s892_s7, %s595_s9  ;;  %p598_p11 = scmp.lt.s32.totalorder %s596_s10, %s590_s27 }
  0x6b   : > { %v252_v26 = vadd.f32 %v251_v14, %v246_v20  ;;  %p593_p5 = pneg %p592_p0 }
  0x6c   : > { %v272_v30 = vadd.f32 %v271_v25, %v267_v27  ;;  %p599_p3 = por %p598_p11, %p597_p10 }
  0x6d   : > { %v255_v29 = vadd.f32 %v254_v24, %v252_v26 }
  0x6e   : > { %v277_v33 = vadd.f32 %v276_v28, %v272_v30  ;;  %p600_p7 = pnand %p599_p3, %p593_p5 }
  0x6f   : > { %v256_v32 = vmax.f32 %v255_v29, -4.0 }
  0x70   : > { %v280_v35 = vadd.f32 %v279_v31, %v277_v33 }
  0x71   : > { %v257_v34 = vmin.f32 %v256_v32, 5.0 }
  0x72   : > { %v281_v36 = vmax.f32 %v280_v35, -4.0 }
  0x73   : > { %258 = vst [vmem:[%s230_s6] sm:$0x3] %v257_v34 }
  0x74   : > { %v282_v37 = vmin.f32 %v281_v36, 5.0 }
  0x76   : > { %437 = vst [vmem:[%s230_s6 + $0x2] sm:$0x3] %v282_v37 }
  0x77   : > { %603 = shalt.err (!%p600_p7)
}
  0x78   : > { %s604_s11 = scalar_lea.hbm %s897_s28, 64  ;;  %s608_s4 = scalar_lea.hbm %s949_s3, 128 }
  0x79   : > { %p605_p9 = scmp.ne.s32.totalorder %s897_s28, %s604_s11  ;;  %p609_p1 = scmp.lt.u32.totalorder %s897_s28, %s949_s3 }
  0x7a   : > { %p610_p8 = scmp.lt.u32.totalorder %s608_s4, %s604_s11  ;;  %p612_p4 = scmp.lt.u32.totalorder %s604_s11, %s897_s28 }
  0x7b   : > { %p606_p2 = pnand %p605_p9, %p963_p12 }
  0x7c   : > { %p611_p13 = por %p610_p8, %p609_p1 }
  0x7d   : > { %p607_p6 = pneg %p606_p2 }
  0x7e   : > { %p613_p0 = por %p612_p4, %p611_p13 }
  0x80   : > { %p614_p5 = pnand %p613_p0, %p607_p6 }
  0x82   : > { %617 = shalt.err (!%p614_p5)
}
  0x83   : > { %s688_s6 = smov 32   ;;  %s689_s25 = smov 2  }
  0x84   : > { %455 = dma.vmem_to_hbm [thread:$0]  (%p963_p12), %s892_s7, 64, %s897_s28, %s286_s21, %s688_s6, %s688_s6, %s689_s25  }
  0x85 PF: > { %s315_s29 = sand.u32 1, %s660_s12   ;;  %p964_p10 = scmp.ne.s32.totalorder %s957_s24, 0 }
  0x86   : > { %p965_p11 = scmp.ge.s32.totalorder %s680_s17, 2  ;;  %s316_s30 = scalar_lea.sflag [#allocation4], %s315_s29 }
  0x88   : > { %p469_p3 = pnand %p965_p11, %p964_p10 }
  0x8a   : > { %655 = dma.done.wait (!%p469_p3), %s316_s30, 64  }
  0x8b   : > { %657 = vsyncadd (!%p469_p3), %s316_s30, 4294967232  ;;  %s21_s17 = sadd.s32 1, %s680_s17   ;;  %s966_s12 = smov %s664_s13 }
  0x8c   : > { %p18_p7 = scmp.ge.s32.totalorder %s21_s17, 4   ;;  %s967_s13 = smov %s668_s14 }
  0x8d   : > { %s968_s14 = smov %s826_s26  ;;  %s969_s15 = smov %s676_s16 }
  0x8e   : > { %s970_s16 = smov %s972_s5  ;;  %20 = sbr.rel (!%p18_p7) target bundleno = 8 (0x8), region = 91 }
  0x95   :  { %321 = vsyncpa [#allocation3], 1 }
  0x96   :  { %323 = vsyncpa [#allocation3 + $0x1], 1 }
  0x97   :  { %324 = vsyncpa [#allocation4], 1 }
  0x98   :  { %326 = vsyncpa [#allocation4 + $0x1], 1 }
  0x99   :  { %327 = vsyncpa [#allocation5], 1 }
  0x9a   :  { %329 = vsyncpa [#allocation5 + $0x1], 1 }
  0x9b   :  { %330 = vsyncpa [#allocation6], 1 }
  0x9c   :  { %332 = vsyncpa [#allocation6 + $0x1], 1 }

</bundles_post_ra>
